<compile_context>
chip_gen: v7x
topology: tpu7x:2x2x1
jax: 0.10.0
libtpu: 0.0.40
codegen_flags: <defaults>
</compile_context>

<pallas_src>
import functools

import jax
import jax.numpy as jnp
from jax.experimental import pallas as pl
from jax.experimental.pallas import tpu as pltpu

_LANES = 128
_ROW_ALIGN = _LANES * 8        # tb multiple of 1024 -> packed sublane dim % 8 == 0
_MAX_BLOCK_ROWS = 131072       # caps double-buffered VMEM use at ~11.6 MiB
_XLA_FALLBACK_ROWS = 1024      # below this, plain XLA beats any kernel launch


def _affine_kernel(x_ref, w_ref, b_ref, o_ref):
    # x_ref: [tb/128, 1280] (VMEM, streamed)   w_ref: [1280, 128] (VMEM, resident)
    # b_ref: [1]            (SMEM scalar)      o_ref: [tb/128, 128] (VMEM, lane-dense)
    y = jnp.dot(x_ref[...], w_ref[...], preferred_element_type=jnp.float32)
    o_ref[...] = (y + b_ref[0]).astype(o_ref.dtype)


def _round_up(x, m):
    return (x + m - 1) // m * m


@functools.partial(jax.jit, static_argnames=("block_rows",))
def two_layer_forward(x, w1, b1, w2, b2, *, block_rows=65536):
    """x: [B, 10] f32. w1: [5, 10], b1: [5], w2: [1, 5], b2: [1] (PyTorch layout)."""
    B, K = x.shape

    # Exact collapse of Linear(10,5) -> Linear(5,1) (no activation in between).
    w_eff = (w2 @ w1).astype(x.dtype)              # [1, K]
    b_eff = (w2 @ b1 + b2).astype(x.dtype)         # [1]

    # Small-batch fallback: pad-to-128 + launch overhead dominates tiny B.
    if B < _XLA_FALLBACK_ROWS:
        return x @ w_eff.T + b_eff

    # --- Batch tiling ---------------------------------------------------
    bp0 = _round_up(B, _ROW_ALIGN)
    tb = min(_round_up(block_rows, _ROW_ALIGN), bp0, _MAX_BLOCK_ROWS)
    # Keep >= 2 grid steps when possible so v7x's second TensorCore is used.
    if tb == bp0 and bp0 >= 2 * _ROW_ALIGN:
        tb = _round_up(-(-bp0 // 2), _ROW_ALIGN)
    bp = _round_up(B, tb)                          # padded batch, multiple of tb

    x_in = x if bp == B else jnp.pad(x, ((0, bp - B), (0, 0)))
    # Free row-major reshape: pack 128 batch rows per lane-row (no lane padding).
    x_packed = x_in.reshape(bp // _LANES, _LANES * K)          # [bp/128, 1280]

    # W_pack[j*K + k, j'] = (j == j') * w_eff[k]  -> one matmul does the K
    # contraction AND the sublane->lane relayout on the MXU.
    w_pack = jnp.kron(jnp.eye(_LANES, dtype=x.dtype), w_eff.reshape(K, 1))

    out = pl.pallas_call(
        _affine_kernel,
        out_shape=jax.ShapeDtypeStruct((bp // _LANES, _LANES), x.dtype),
        grid=(bp // tb,),
        in_specs=[
            pl.BlockSpec((tb // _LANES, _LANES * K), lambda i: (i, 0)),   # x (streamed)
            pl.BlockSpec((_LANES * K, _LANES), lambda i: (0, 0)),         # W_pack (resident)
            pl.BlockSpec(memory_space=pltpu.MemorySpace.SMEM),            # b_eff scalar
        ],
        out_specs=pl.BlockSpec((tb // _LANES, _LANES), lambda i: (i, 0)), # lane-dense slab
        compiler_params=pltpu.CompilerParams(
            dimension_semantics=("parallel",)),
    )(x_packed, w_pack, b_eff)

    # Free row-major reshape back to [bp, 1], then drop padded rows.
    return out.reshape(bp, 1)[:B]


if __name__ == "__main__":
    key = jax.random.PRNGKey(0)
    k_x, k_w1, k_b1, k_w2, k_b2 = jax.random.split(key, 5)

    D_IN, D_HID, D_OUT = 10, 5, 1
    B = 4096

    x = jax.random.normal(k_x, (B, D_IN), dtype=jnp.float32)
    # Deterministic params (PyTorch Linear layout: [out, in]).
    w1 = jax.random.uniform(k_w1, (D_HID, D_IN), jnp.float32, -0.3, 0.3)
    b1 = jax.random.uniform(k_b1, (D_HID,), jnp.float32, -0.3, 0.3)
    w2 = jax.random.uniform(k_w2, (D_OUT, D_HID), jnp.float32, -0.4, 0.4)
    b2 = jax.random.uniform(k_b2, (D_OUT,), jnp.float32, -0.4, 0.4)

    ref = (x @ w1.T + b1) @ w2.T + b2

    # Kernel path with several grid steps (block_rows=1024 -> 4 steps).
    out = jax.block_until_ready(
        two_layer_forward(x, w1, b1, w2, b2, block_rows=1024))
    assert out.shape == (B, D_OUT), out.shape
    assert jnp.allclose(out, ref, atol=1e-4, rtol=1e-4)

    # Ragged batch through the kernel (exercises pad + slice path).
    out_r = jax.block_until_ready(
        two_layer_forward(x[:3000], w1, b1, w2, b2, block_rows=1024))
    assert out_r.shape == (3000, D_OUT)
    assert jnp.allclose(out_r, ref[:3000], atol=1e-4, rtol=1e-4)

    # Tiny batch (the module's own use case) -> plain-XLA fallback.
    out_s = jax.block_until_ready(two_layer_forward(x[:8], w1, b1, w2, b2))
    assert out_s.shape == (8, D_OUT)
    assert jnp.allclose(out_s, ref[:8], atol=1e-4, rtol=1e-4)

    print("KERNEL_OK")
</pallas_src>

<mosaic_0001>
module attributes {stable_mosaic.version = 11 : i64} {
  func.func @_affine_kernel(%arg0: i32, %arg1: memref<8x1280xf32, #tpu.memory_space<vmem>>, %arg2: memref<1280x128xf32, #tpu.memory_space<vmem>>, %arg3: memref<1xf32, #tpu.memory_space<smem>>, %arg4: memref<8x128xf32, #tpu.memory_space<vmem>>) attributes {dimension_semantics = [#tpu.dimension_semantics<parallel>], iteration_bounds = array<i64: 4>, scalar_prefetch = 0 : i64, scratch_operands = 0 : i64, tpu.core_type = #tpu.core_type<tc>, window_params = [{transform_indices = @transform_0, window_bounds = array<i64: 8, 1280>}, {pipeline_mode = #tpu.pipeline_mode<synchronous>, transform_indices = @transform_1, window_bounds = array<i64: 1280, 128>}, {transform_indices = @transform_2, window_bounds = array<i64: 1>}, {transform_indices = @transform_3, window_bounds = array<i64: 8, 128>}]} {
    %c0 = arith.constant 0 : index
    %c0_0 = arith.constant 0 : index
    %0 = vector.load %arg1[%c0, %c0_0] : memref<8x1280xf32, #tpu.memory_space<vmem>>, vector<8x1280xf32>
    %c0_1 = arith.constant 0 : index
    %c0_2 = arith.constant 0 : index
    %1 = vector.load %arg2[%c0_1, %c0_2] : memref<1280x128xf32, #tpu.memory_space<vmem>>, vector<1280x128xf32>
    %cst = arith.constant dense<0.000000e+00> : vector<8x128xf32>
    %2 = tpu.matmul %0, %1, %cst {dimension_numbers = #tpu.dot_dimension_numbers<[1], [0], [0], [1], [0, 0, 1, 1], [], []>} : vector<8x1280xf32>, vector<1280x128xf32>, vector<8x128xf32> -> vector<8x128xf32>
    %c0_3 = arith.constant 0 : index
    %3 = memref.load %arg3[%c0_3] : memref<1xf32, #tpu.memory_space<smem>>
    %4 = vector.broadcast %3 : f32 to vector<8x128xf32>
    %5 = arith.addf %2, %4 : vector<8x128xf32>
    %c0_4 = arith.constant 0 : index
    %c0_5 = arith.constant 0 : index
    %6 = vector.load %arg4[%c0_4, %c0_5] : memref<8x128xf32, #tpu.memory_space<vmem>>, vector<8x128xf32>
    tpu.vector_store %arg4[%c0_4, %c0_5], %5 {strides = array<i32>} : memref<8x128xf32, #tpu.memory_space<vmem>>, vector<8x128xf32>,
    return
  }
  func.func @transform_0(%arg0: i32) -> (i32, i32) {
    %c0_i32 = arith.constant 0 : i32
    %c0_i32_0 = arith.constant 0 : i32
    return %arg0, %c0_i32 : i32, i32
  }
  func.func @transform_1(%arg0: i32) -> (i32, i32) {
    %c0_i32 = arith.constant 0 : i32
    %c0_i32_0 = arith.constant 0 : i32
    %c0_i32_1 = arith.constant 0 : i32
    return %c0_i32, %c0_i32_0 : i32, i32
  }
  func.func @transform_2(%arg0: i32) -> i32 {
    %c0_i32 = arith.constant 0 : i32
    %c0_i32_0 = arith.constant 0 : i32
    return %c0_i32 : i32
  }
  func.func @transform_3(%arg0: i32) -> (i32, i32) {
    %c0_i32 = arith.constant 0 : i32
    %c0_i32_0 = arith.constant 0 : i32
    return %arg0, %c0_i32 : i32, i32
  }
}

</mosaic_0001>

<bundles_post_ra>
// kernel: two_layer_forward.1
= control target key start
LH: loop header
LB: loop body
LE: loop exit
PB: predicated region body
PF: predicated region fallthrough
CT: control target
= control target key end

     0   :  { %s1836_s0 = inlined_call_operand.vmem [shape: f32[32,1280], index: 0, kind: input, shape index: {}]   ;;  %s1837_s1 = inlined_call_operand.vmem [shape: f32[1280,128], index: 1, kind: input, shape index: {}]   ;;  %s1838_s2 = inlined_call_operand.<no memory space> [shape: f32[1], index: 2, kind: input, shape index: {}]   ;;  %s1839_s3 = inlined_call_operand.hbm [shape: f32[32,128], index: 3, kind: output, shape index: {}]  }
   0x1   :  { %8 = sst [smem:[#allocation2]] %s1838_s2 }
   0x2   :  { %9 = vsyncpa [#allocation4], 0 }
   0x3   :  { %11 = vsyncpa [#allocation4 + $0x1], 0  ;;  %s1239_s14 = smov 0   ;;  %s1241_s15 = smov 0  }
   0x4   :  { %s1243_s16 = smov 0   ;;  %s1245_s17 = smov 0  }
   0x5 LB: > { %s1260_s2 = sadd.s32 4294967295, %s1213_s17   ;;  %s766_s18 = sadd.s32 4294967294, %s1213_s17   ;;  %s1213_s17 = sphi %s1245_s17, %s1845_s17   ;;  %s1209_s16 = sphi %s1243_s16, %s1844_s16   ;;  %s1205_s15 = sphi %s1241_s15, %s1843_s15   ;;  %s1201_s14 = sphi %s1239_s14, %s1842_s14  }
   0x6   : > { %s1264_s19 = sadd.s32 1, %s1213_s17   ;;  %s92_s20 = sadd.s32 1, %s1209_s16 }
   0x7   : > { %s89_s21 = ssub.s32 %s1213_s17, %s1264_s19  ;;  %p102_p0 = scmp.ne.s32.totalorder %s1209_s16, %s1205_s15 }
   0x8   : > { %p90_p1 = scmp.eq.s32.totalorder %s89_s21, 0  ;;  %p103_p2 = scmp.eq.s32.totalorder %s1260_s2, 3 }
   0x9   : > { %p108_p3 = scmp.ne.s32.totalorder %s1205_s15, %s1201_s14  ;;  %p109_p4 = scmp.eq.s32.totalorder %s766_s18, 3 }
   0xa   : > { %s1275_s22 = scalar_select %p90_p1, %s1209_s16, %s92_s20  }
   0xb   : > { %p1277_p5 = por %p103_p2, %p102_p0  ;;  %p1281_p6 = por %p109_p4, %p108_p3 }
   0xc   : > { %p769_p7 = scmp.ge.s32.totalorder %s1213_s17, 1  ;;  %p141_p8 = scmp.lt.s32.totalorder %s1213_s17, 5 }
   0xe   : > { %p142_p9 = pnand %p769_p7, %p141_p8 }
   0xf   : > { %v196_v0 = vld [vmem:[%s1837_s1 + $0x80] sm:$0xff] (!%p142_p9)  ;;  %v197_v1 = vld [vmem:[%s1837_s1 + $0x88] sm:$0xff] (!%p142_p9)  ;;  %v198_v11 = vld [vmem:[%s1837_s1 + $0x90] sm:$0xff] (!%p142_p9)  ;;  %p165_p10 = scmp.lt.s32.totalorder (!%p142_p9), %s1260_s2, 3  ;;  %s340_s12 = sld [smem:[#allocation2]] (!%p142_p9) }
  0x10   : > { %145 = sbr.rel (%p142_p9) target bundleno = 345 (0x159), region = 32  ;;  %v180_v2 = vld [vmem:[%s1837_s1] sm:$0xff] (!%p142_p9)  ;;  %v951_v3 = vpack.c.bf16 (!%p142_p9), %v197_v1, %v196_v0  ;;  %v181_v4 = vld [vmem:[%s1837_s1 + $0x8] sm:$0xff] (!%p142_p9)  ;;  %v199_v13 = vld [vmem:[%s1837_s1 + $0x98] sm:$0xff] (!%p142_p9)  ;;  %s773_s18 = sshll.u32 (!%p142_p9), %s1260_s2, 7 }
  0x11   : > { %v228_v5 = vld [vmem:[%s1837_s1 + $0x180] sm:$0xff] (!%p142_p9)  ;;  %v229_v6 = vld [vmem:[%s1837_s1 + $0x188] sm:$0xff] (!%p142_p9)  ;;  %v953_v7 = vpack.c.bf16 (!%p142_p9), %v181_v4, %v180_v2  ;;  %v182_v14 = vld [vmem:[%s1837_s1 + $0x10] sm:$0xff] (!%p142_p9)  ;;  %v955_v16 = vpack.c.bf16 (!%p142_p9), %v199_v13, %v198_v11  ;;  %s1794_s27 = scalar_lea.hbm (!%p142_p9), %s1839_s3, %s773_s18 }
  0x12   : > { %v983_v8 = vpack.c.bf16 (!%p142_p9), %v229_v6, %v228_v5  ;;  %v212_v9 = vld [vmem:[%s1837_s1 + $0x100] sm:$0xff] (!%p142_p9)  ;;  %v213_v10 = vld [vmem:[%s1837_s1 + $0x108] sm:$0xff] (!%p142_p9)  ;;  %952 = vmatprep.subr.bf16.mxu0 (!%p142_p9), %v951_v3  ;;  %v183_v15 = vld [vmem:[%s1837_s1 + $0x18] sm:$0xff] (!%p142_p9) }
  0x13   : > { %v985_v12 = vpack.c.bf16 (!%p142_p9), %v213_v10, %v212_v9  ;;  %954 = vmatpush3.bf16.msra.mxu0 (!%p142_p9), %v953_v7  ;;  %v957_v17 = vpack.c.bf16 (!%p142_p9), %v183_v15, %v182_v14  ;;  %v230_v18 = vld [vmem:[%s1837_s1 + $0x190] sm:$0xff] (!%p142_p9)  ;;  %v231_v19 = vld [vmem:[%s1837_s1 + $0x198] sm:$0xff] (!%p142_p9)  ;;  %v200_v23 = vld [vmem:[%s1837_s1 + $0xa0] sm:$0xff] (!%p142_p9) }
  0x14   : > { %984 = vmatprep.subr.bf16.mxu1 (!%p142_p9), %v983_v8  ;;  %v214_v20 = vld [vmem:[%s1837_s1 + $0x110] sm:$0xff] (!%p142_p9)  ;;  %v987_v21 = vpack.c.bf16 (!%p142_p9), %v231_v19, %v230_v18  ;;  %v215_v22 = vld [vmem:[%s1837_s1 + $0x118] sm:$0xff] (!%p142_p9)  ;;  %v201_v24 = vld [vmem:[%s1837_s1 + $0xa8] sm:$0xff] (!%p142_p9)  ;;  %956 = vmatprep.subr.bf16.mxu0 (!%p142_p9), %v955_v16 }
  0x15   : > { %986 = vmatpush3.bf16.msra.mxu1 (!%p142_p9), %v985_v12  ;;  %v989_v25 = vpack.c.bf16 (!%p142_p9), %v215_v22, %v214_v20  ;;  %v959_v26 = vpack.c.bf16 (!%p142_p9), %v201_v24, %v200_v23  ;;  %v184_v27 = vld [vmem:[%s1837_s1 + $0x20] sm:$0xff] (!%p142_p9)  ;;  %v185_v28 = vld [vmem:[%s1837_s1 + $0x28] sm:$0xff] (!%p142_p9)  ;;  %v202_v35 = vld [vmem:[%s1837_s1 + $0xb0] sm:$0xff] (!%p142_p9) }
  0x16   : > { %v232_v29 = vld [vmem:[%s1837_s1 + $0x1a0] sm:$0xff] (!%p142_p9)  ;;  %988 = vmatprep.subr.bf16.mxu1 (!%p142_p9), %v987_v21  ;;  %v233_v30 = vld [vmem:[%s1837_s1 + $0x1a8] sm:$0xff] (!%p142_p9)  ;;  %v961_v33 = vpack.c.bf16 (!%p142_p9), %v185_v28, %v184_v27  ;;  %v203_v36 = vld [vmem:[%s1837_s1 + $0xb8] sm:$0xff] (!%p142_p9) }
  0x17   : > { %v216_v31 = vld [vmem:[%s1837_s1 + $0x120] sm:$0xff]  ;;  %v217_v32 = vld [vmem:[%s1837_s1 + $0x128] sm:$0xff]  ;;  %958 = vmatpush3.bf16.msra.mxu0 %v957_v17  ;;  %v991_v34 = vpack.c.bf16 %v233_v30, %v232_v29  ;;  %v186_v37 = vld [vmem:[%s1837_s1 + $0x30] sm:$0xff]  ;;  %v963_v39 = vpack.c.bf16 %v203_v36, %v202_v35  ;;  %s1381_s28 = scalar_select %p165_p10, %s1260_s2, 3 }
  0x18   : > { %960 = vmatprep.subr.bf16.mxu0 %v959_v26  ;;  %v993_v38 = vpack.c.bf16 %v217_v32, %v216_v31  ;;  %v187_v40 = vld [vmem:[%s1837_s1 + $0x38] sm:$0xff]  ;;  %v234_v41 = vld [vmem:[%s1837_s1 + $0x1b0] sm:$0xff]  ;;  %v204_v46 = vld [vmem:[%s1837_s1 + $0xc0] sm:$0xff]  ;;  %s1215_s2 = smov [#allocation3]  }
  0x19   : > { %990 = vmatpush3.bf16.msra.mxu1 %v989_v25  ;;  %v235_v42 = vld [vmem:[%s1837_s1 + $0x1b8] sm:$0xff]  ;;  %v218_v44 = vld [vmem:[%s1837_s1 + $0x130] sm:$0xff]  ;;  %v205_v47 = vld [vmem:[%s1837_s1 + $0xc8] sm:$0xff]  ;;  %v965_v48 = vpack.c.bf16 %v187_v40, %v186_v37  ;;  %s1111_s29 = smul.u32 80, %s1381_s28  ;;  %s1155_s6 = sshll.u32 %s1215_s2, 4  ;;  %s1156_s6 = int_to_ptr.vmem [resolvable:$false] %s1155_s6 }
  0x1a   : > { %992 = vmatprep.subr.bf16.mxu1 %v991_v34  ;;  %v995_v43 = vpack.c.bf16 %v235_v42, %v234_v41  ;;  %v219_v45 = vld [vmem:[%s1837_s1 + $0x138] sm:$0xff]  ;;  %v236_v49 = vld [vmem:[%s1837_s1 + $0x1c0] sm:$0xff]  ;;  %v237_v50 = vld [vmem:[%s1837_s1 + $0x1c8] sm:$0xff]  ;;  %v967_v52 = vpack.c.bf16 %v205_v47, %v204_v46  ;;  %s1157_s7 = scalar_lea.vmem %s1156_s6, 256 }
  0x1b   : > { %962 = vmatpush3.bf16.msra.mxu0 %v961_v33  ;;  %v997_v51 = vpack.c.bf16 %v219_v45, %v218_v44  ;;  %v188_v53 = vld [vmem:[%s1837_s1 + $0x40] sm:$0xff]  ;;  %v189_v54 = vld [vmem:[%s1837_s1 + $0x48] sm:$0xff]  ;;  %v999_v56 = vpack.c.bf16 %v237_v50, %v236_v49  ;;  %v206_v58 = vld [vmem:[%s1837_s1 + $0xd0] sm:$0xff]  ;;  %s1438_s30 = scalar_lea.vmem %s1836_s0, %s1111_s29 }
  0x1c   : > { %964 = vmatprep.subr.bf16.mxu0 %v963_v39  ;;  %v220_v55 = vld [vmem:[%s1837_s1 + $0x140] sm:$0xff]  ;;  %v221_v57 = vld [vmem:[%s1837_s1 + $0x148] sm:$0xff]  ;;  %v207_v59 = vld [vmem:[%s1837_s1 + $0xd8] sm:$0xff]  ;;  %v969_v62 = vpack.c.bf16 %v189_v54, %v188_v53 }
  0x1d   : > { %994 = vmatpush3.bf16.msra.mxu1 %v993_v38  ;;  %v238_v60 = vld [vmem:[%s1837_s1 + $0x1d0] sm:$0xff]  ;;  %v239_v61 = vld [vmem:[%s1837_s1 + $0x1d8] sm:$0xff]  ;;  %v1001_v63 = vpack.c.bf16 %v221_v57, %v220_v55  ;;  %v971_v0 = vpack.c.bf16 %v207_v59, %v206_v58  ;;  %v208_v6 = vld [vmem:[%s1837_s1 + $0xe0] sm:$0xff] }
  0x1e   : > { %996 = vmatprep.subr.bf16.mxu1 %v995_v43  ;;  %v190_v1 = vld [vmem:[%s1837_s1 + $0x50] sm:$0xff]  ;;  %v191_v2 = vld [vmem:[%s1837_s1 + $0x58] sm:$0xff]  ;;  %v1003_v4 = vpack.c.bf16 %v239_v61, %v238_v60  ;;  %v209_v7 = vld [vmem:[%s1837_s1 + $0xe8] sm:$0xff] }
  0x1f   : > { %966 = vmatpush3.bf16.msra.mxu0 %v965_v48  ;;  %v222_v3 = vld [vmem:[%s1837_s1 + $0x150] sm:$0xff]  ;;  %v223_v5 = vld [vmem:[%s1837_s1 + $0x158] sm:$0xff]  ;;  %v240_v8 = vld [vmem:[%s1837_s1 + $0x1e0] sm:$0xff]  ;;  %v973_v10 = vpack.c.bf16 %v191_v2, %v190_v1  ;;  %v975_v14 = vpack.c.bf16 %v209_v7, %v208_v6 }
  0x20   : > { %968 = vmatprep.subr.bf16.mxu0 %v967_v52  ;;  %v241_v9 = vld [vmem:[%s1837_s1 + $0x1e8] sm:$0xff]  ;;  %v192_v11 = vld [vmem:[%s1837_s1 + $0x60] sm:$0xff]  ;;  %v1005_v13 = vpack.c.bf16 %v223_v5, %v222_v3  ;;  %v210_v19 = vld [vmem:[%s1837_s1 + $0xf0] sm:$0xff] }
  0x21   : > { %998 = vmatpush3.bf16.msra.mxu1 %v997_v51  ;;  %v171_v12 = vld [vmem:[%s1438_s30 + $0x8] sm:$0xff]  ;;  %v224_v16 = vld [vmem:[%s1837_s1 + $0x160] sm:$0xff]  ;;  %v1007_v18 = vpack.c.bf16 %v241_v9, %v240_v8  ;;  %v211_v20 = vld [vmem:[%s1837_s1 + $0xf8] sm:$0xff] }
  0x22   : > { %1000 = vmatprep.subr.bf16.mxu1 %v999_v56  ;;  %v193_v15 = vld [vmem:[%s1837_s1 + $0x68] sm:$0xff]  ;;  %406 = vmatprep.mubr.f32.mxu0 %v171_v12  ;;  %v173_v21 = vld [vmem:[%s1438_s30 + $0x18] sm:$0xff]  ;;  %v242_v22 = vld [vmem:[%s1837_s1 + $0x1f0] sm:$0xff]  ;;  %v979_v26 = vpack.c.bf16 %v211_v20, %v210_v19 }
  0x23   : > { %970 = vmatpush3.bf16.msra.mxu0 %v969_v62  ;;  %v225_v17 = vld [vmem:[%s1837_s1 + $0x168] sm:$0xff]  ;;  %v243_v23 = vld [vmem:[%s1837_s1 + $0x1f8] sm:$0xff]  ;;  %476 = vmatprep.mubr.f32.mxu1 %v173_v21  ;;  %v977_v24 = vpack.c.bf16 %v193_v15, %v192_v11  ;;  %v194_v27 = vld [vmem:[%s1837_s1 + $0x70] sm:$0xff] }
  0x24   : > { %972 = vmatprep.subr.bf16.mxu0 %v971_v0  ;;  %v1009_v25 = vpack.c.bf16 %v225_v17, %v224_v16  ;;  %v195_v28 = vld [vmem:[%s1837_s1 + $0x78] sm:$0xff]  ;;  %v226_v29 = vld [vmem:[%s1837_s1 + $0x170] sm:$0xff]  ;;  %v1011_v30 = vpack.c.bf16 %v243_v23, %v242_v22  ;;  %v260_v32 = vld [vmem:[%s1837_s1 + $0x280] sm:$0xff] }
  0x25   : > { %1002 = vmatpush3.bf16.msra.mxu1 %v1001_v63  ;;  %v227_v31 = vld [vmem:[%s1837_s1 + $0x178] sm:$0xff]  ;;  %v261_v33 = vld [vmem:[%s1837_s1 + $0x288] sm:$0xff]  ;;  %v292_v34 = vld [vmem:[%s1837_s1 + $0x380] sm:$0xff]  ;;  %v981_v36 = vpack.c.bf16 %v195_v28, %v194_v27 }
  0x26   : > { %1004 = vmatprep.subr.bf16.mxu1 %v1003_v4  ;;  %v293_v35 = vld [vmem:[%s1837_s1 + $0x388] sm:$0xff]  ;;  %v1013_v37 = vpack.c.bf16 %v227_v31, %v226_v29  ;;  %v1015_v38 = vpack.c.bf16 %v261_v33, %v260_v32  ;;  %v244_v39 = vld [vmem:[%s1837_s1 + $0x200] sm:$0xff]  ;;  %v262_v44 = vld [vmem:[%s1837_s1 + $0x290] sm:$0xff] }
  0x27   : > { %974 = vmatpush3.bf16.msra.mxu0 %v973_v10  ;;  %v245_v40 = vld [vmem:[%s1837_s1 + $0x208] sm:$0xff]  ;;  %v276_v41 = vld [vmem:[%s1837_s1 + $0x300] sm:$0xff]  ;;  %v1047_v42 = vpack.c.bf16 %v293_v35, %v292_v34  ;;  %v263_v45 = vld [vmem:[%s1837_s1 + $0x298] sm:$0xff] }
  0x28   : > { %976 = vmatprep.subr.bf16.mxu0 %v975_v14  ;;  %v277_v43 = vld [vmem:[%s1837_s1 + $0x308] sm:$0xff]  ;;  %v294_v46 = vld [vmem:[%s1837_s1 + $0x390] sm:$0xff]  ;;  %v295_v47 = vld [vmem:[%s1837_s1 + $0x398] sm:$0xff]  ;;  %v1017_v49 = vpack.c.bf16 %v245_v40, %v244_v39  ;;  %v1019_v52 = vpack.c.bf16 %v263_v45, %v262_v44 }
  0x29   : > { %1006 = vmatpush3.bf16.msra.mxu1 %v1005_v13  ;;  %v170_v48 = vld [vmem:[%s1438_s30] sm:$0xff]  ;;  %v172_v50 = vld [vmem:[%s1438_s30 + $0x10] sm:$0xff]  ;;  %v1049_v51 = vpack.c.bf16 %v277_v43, %v276_v41  ;;  %v247_v54 = vld [vmem:[%s1837_s1 + $0x218] sm:$0xff]  ;;  %v1051_v56 = vpack.c.bf16 %v295_v47, %v294_v46 }
  0x2a   : > { %1008 = vmatprep.subr.bf16.mxu1 %v1007_v18  ;;  %v246_v53 = vld [vmem:[%s1837_s1 + $0x210] sm:$0xff]  ;;  %v279_v57 = vld [vmem:[%s1837_s1 + $0x318] sm:$0xff]  ;;  %v264_v58 = vld [vmem:[%s1837_s1 + $0x2a0] sm:$0xff] }
  0x2b   : > { %978 = vmatpush3.bf16.msra.mxu0 %v977_v24  ;;  %v278_v55 = vld [vmem:[%s1837_s1 + $0x310] sm:$0xff]  ;;  %v265_v59 = vld [vmem:[%s1837_s1 + $0x2a8] sm:$0xff]  ;;  %v296_v60 = vld [vmem:[%s1837_s1 + $0x3a0] sm:$0xff]  ;;  %v1021_v62 = vpack.c.bf16 %v247_v54, %v246_v53 }
  0x2c   : > { %980 = vmatprep.subr.bf16.mxu0 %v979_v26  ;;  %v297_v61 = vld [vmem:[%s1837_s1 + $0x3a8] sm:$0xff]  ;;  %v1053_v63 = vpack.c.bf16 %v279_v57, %v278_v55  ;;  %v1023_v0 = vpack.c.bf16 %v265_v59, %v264_v58  ;;  %v248_v1 = vld [vmem:[%s1837_s1 + $0x220] sm:$0xff]  ;;  %v266_v6 = vld [vmem:[%s1837_s1 + $0x2b0] sm:$0xff] }
  0x2d   : > { %1010 = vmatpush3.bf16.msra.mxu1 %v1009_v25  ;;  %v249_v2 = vld [vmem:[%s1837_s1 + $0x228] sm:$0xff]  ;;  %v280_v3 = vld [vmem:[%s1837_s1 + $0x320] sm:$0xff]  ;;  %v1055_v4 = vpack.c.bf16 %v297_v61, %v296_v60  ;;  %v267_v7 = vld [vmem:[%s1837_s1 + $0x2b8] sm:$0xff] }
  0x2e   : > { %1012 = vmatprep.subr.bf16.mxu1 %v1011_v30  ;;  %v281_v5 = vld [vmem:[%s1837_s1 + $0x328] sm:$0xff]  ;;  %v298_v8 = vld [vmem:[%s1837_s1 + $0x3b0] sm:$0xff]  ;;  %v299_v9 = vld [vmem:[%s1837_s1 + $0x3b8] sm:$0xff]  ;;  %v1025_v10 = vpack.c.bf16 %v249_v2, %v248_v1  ;;  %v1027_v12 = vpack.c.bf16 %v267_v7, %v266_v6 }
  0x2f   : > { %982 = vmatpush3.bf16.msra.mxu0 %v981_v36  ;;  %v1057_v11 = vpack.c.bf16 %v281_v5, %v280_v3  ;;  %v250_v13 = vld [vmem:[%s1837_s1 + $0x230] sm:$0xff]  ;;  %v251_v14 = vld [vmem:[%s1837_s1 + $0x238] sm:$0xff]  ;;  %v1059_v16 = vpack.c.bf16 %v299_v9, %v298_v8  ;;  %v268_v18 = vld [vmem:[%s1837_s1 + $0x2c0] sm:$0xff] }
  0x30   : > { %1016 = vmatprep.subr.bf16.mxu0 %v1015_v38  ;;  %v282_v15 = vld [vmem:[%s1837_s1 + $0x330] sm:$0xff]  ;;  %v283_v17 = vld [vmem:[%s1837_s1 + $0x338] sm:$0xff]  ;;  %v269_v19 = vld [vmem:[%s1837_s1 + $0x2c8] sm:$0xff]  ;;  %v1029_v23 = vpack.c.bf16 %v251_v14, %v250_v13 }
  0x31   : > { %1014 = vmatpush3.bf16.msra.mxu1 %v1013_v37  ;;  %v300_v20 = vld [vmem:[%s1837_s1 + $0x3c0] sm:$0xff]  ;;  %v301_v21 = vld [vmem:[%s1837_s1 + $0x3c8] sm:$0xff]  ;;  %v1061_v25 = vpack.c.bf16 %v283_v17, %v282_v15  ;;  %v1031_v26 = vpack.c.bf16 %v269_v19, %v268_v18  ;;  %v177_v29 = vld [vmem:[%s1438_s30 + $0x38] sm:$0xff] }
  0x32   : > { %1048 = vmatprep.subr.bf16.mxu1 %v1047_v42  ;;  %407 = vmatmul.mubr.f32.vlgmr.msra.gmra.mrb[0].mxu0 %v170_v48  ;;  %v175_v22 = vld [vmem:[%s1438_s30 + $0x28] sm:$0xff]  ;;  %v252_v24 = vld [vmem:[%s1837_s1 + $0x240] sm:$0xff]  ;;  %v1063_v30 = vpack.c.bf16 %v301_v21, %v300_v20  ;;  %v270_v32 = vld [vmem:[%s1837_s1 + $0x2d0] sm:$0xff] }
  0x33   : > { %1018 = vmatpush3.bf16.msra.mxu0 %v1017_v49  ;;  %546 = vmatprep.mubr.f32.mxu0 %v175_v22  ;;  %v253_v27 = vld [vmem:[%s1837_s1 + $0x248] sm:$0xff]  ;;  %v284_v28 = vld [vmem:[%s1837_s1 + $0x340] sm:$0xff]  ;;  %v271_v33 = vld [vmem:[%s1837_s1 + $0x2d8] sm:$0xff] }
  0x34   : > { %477 = vmatmul.mubr.f32.vlgmr.msra.gmra.mrb[0].mxu1 %v172_v50  ;;  %1020 = vmatprep.subr.bf16.mxu0 %v1019_v52  ;;  %v285_v31 = vld [vmem:[%s1837_s1 + $0x348] sm:$0xff]  ;;  %v302_v34 = vld [vmem:[%s1837_s1 + $0x3d0] sm:$0xff]  ;;  %v303_v35 = vld [vmem:[%s1837_s1 + $0x3d8] sm:$0xff]  ;;  %v1033_v36 = vpack.c.bf16 %v253_v27, %v252_v24  ;;  %v1035_v38 = vpack.c.bf16 %v271_v33, %v270_v32 }
  0x35   : > { %1050 = vmatpush3.bf16.msra.mxu1 %v1049_v51  ;;  %616 = vmatprep.mubr.f32.mxu1 %v177_v29  ;;  %v1065_v37 = vpack.c.bf16 %v285_v31, %v284_v28  ;;  %v254_v39 = vld [vmem:[%s1837_s1 + $0x250] sm:$0xff]  ;;  %v255_v40 = vld [vmem:[%s1837_s1 + $0x258] sm:$0xff]  ;;  %v1067_v42 = vpack.c.bf16 %v303_v35, %v302_v34  ;;  %v272_v44 = vld [vmem:[%s1837_s1 + $0x2e0] sm:$0xff] }
  0x36   : > { %1052 = vmatprep.subr.bf16.mxu1 %v1051_v56  ;;  %v286_v41 = vld [vmem:[%s1837_s1 + $0x350] sm:$0xff]  ;;  %v287_v43 = vld [vmem:[%s1837_s1 + $0x358] sm:$0xff]  ;;  %v273_v45 = vld [vmem:[%s1837_s1 + $0x2e8] sm:$0xff]  ;;  %v1037_v48 = vpack.c.bf16 %v255_v40, %v254_v39 }
  0x37   : > { %1022 = vmatpush3.bf16.msra.mxu0 %v1021_v62  ;;  %v304_v46 = vld [vmem:[%s1837_s1 + $0x3e0] sm:$0xff]  ;;  %v305_v47 = vld [vmem:[%s1837_s1 + $0x3e8] sm:$0xff]  ;;  %v1069_v49 = vpack.c.bf16 %v287_v43, %v286_v41  ;;  %v1039_v50 = vpack.c.bf16 %v273_v45, %v272_v44  ;;  %v274_v56 = vld [vmem:[%s1837_s1 + $0x2f0] sm:$0xff] }
  0x38   : > { %1024 = vmatprep.subr.bf16.mxu0 %v1023_v0  ;;  %v256_v51 = vld [vmem:[%s1837_s1 + $0x260] sm:$0xff]  ;;  %v257_v52 = vld [vmem:[%s1837_s1 + $0x268] sm:$0xff]  ;;  %v1071_v54 = vpack.c.bf16 %v305_v47, %v304_v46  ;;  %v275_v57 = vld [vmem:[%s1837_s1 + $0x2f8] sm:$0xff] }
  0x39   : > { %1054 = vmatpush3.bf16.msra.mxu1 %v1053_v63  ;;  %v288_v53 = vld [vmem:[%s1837_s1 + $0x360] sm:$0xff]  ;;  %v289_v55 = vld [vmem:[%s1837_s1 + $0x368] sm:$0xff]  ;;  %v306_v58 = vld [vmem:[%s1837_s1 + $0x3f0] sm:$0xff]  ;;  %v1041_v60 = vpack.c.bf16 %v257_v52, %v256_v51  ;;  %v1043_v62 = vpack.c.bf16 %v275_v57, %v274_v56 }
  0x3a   : > { %1056 = vmatprep.subr.bf16.mxu1 %v1055_v4  ;;  %v307_v59 = vld [vmem:[%s1837_s1 + $0x3f8] sm:$0xff]  ;;  %v1073_v61 = vpack.c.bf16 %v289_v55, %v288_v53  ;;  %v258_v63 = vld [vmem:[%s1837_s1 + $0x270] sm:$0xff]  ;;  %v324_v4 = vld [vmem:[%s1837_s1 + $0x480] sm:$0xff] }
  0x3b   : > { %1026 = vmatpush3.bf16.msra.mxu0 %v1025_v10  ;;  %v259_v0 = vld [vmem:[%s1837_s1 + $0x278] sm:$0xff]  ;;  %v290_v1 = vld [vmem:[%s1837_s1 + $0x370] sm:$0xff]  ;;  %v1075_v2 = vpack.c.bf16 %v307_v59, %v306_v58  ;;  %v325_v5 = vld [vmem:[%s1837_s1 + $0x488] sm:$0xff]  ;;  %v341_v59 = vstv %s340_s12 }
  0x3c   : > { %1028 = vmatprep.subr.bf16.mxu0 %v1027_v12  ;;  %v291_v3 = vld [vmem:[%s1837_s1 + $0x378] sm:$0xff]  ;;  %v1045_v6 = vpack.c.bf16 %v259_v0, %v258_v63  ;;  %v1079_v8 = vpack.c.bf16 %v325_v5, %v324_v4  ;;  %v308_v9 = vld [vmem:[%s1837_s1 + $0x400] sm:$0xff]  ;;  %v309_v10 = vld [vmem:[%s1837_s1 + $0x408] sm:$0xff] }
  0x3d   : > { %1058 = vmatpush3.bf16.msra.mxu1 %v1057_v11  ;;  %v1077_v7 = vpack.c.bf16 %v291_v3, %v290_v1  ;;  %v326_v11 = vld [vmem:[%s1837_s1 + $0x490] sm:$0xff]  ;;  %v327_v12 = vld [vmem:[%s1837_s1 + $0x498] sm:$0xff]  ;;  %v174_v13 = vld [vmem:[%s1438_s30 + $0x20] sm:$0xff]  ;;  %v1081_v14 = vpack.c.bf16 %v309_v10, %v308_v9 }
  0x3e   : > { %1060 = vmatprep.subr.bf16.mxu1 %v1059_v16  ;;  %v176_v15 = vld [vmem:[%s1438_s30 + $0x30] sm:$0xff]  ;;  %v1083_v16 = vpack.c.bf16 %v327_v12, %v326_v11  ;;  %v311_v18 = vld [vmem:[%s1837_s1 + $0x418] sm:$0xff]  ;;  %v328_v19 = vld [vmem:[%s1837_s1 + $0x4a0] sm:$0xff] }
  0x3f   : > { %1030 = vmatpush3.bf16.msra.mxu0 %v1029_v23  ;;  %v310_v17 = vld [vmem:[%s1837_s1 + $0x410] sm:$0xff]  ;;  %v329_v20 = vld [vmem:[%s1837_s1 + $0x4a8] sm:$0xff]  ;;  %v312_v24 = vld [vmem:[%s1837_s1 + $0x420] sm:$0xff] }
  0x40   : > { %1032 = vmatprep.subr.bf16.mxu0 %v1031_v26  ;;  %v179_v21 = vld [vmem:[%s1438_s30 + $0x48] sm:$0xff]  ;;  %v1085_v22 = vpack.c.bf16 %v311_v18, %v310_v17  ;;  %v1087_v23 = vpack.c.bf16 %v329_v20, %v328_v19  ;;  %v330_v26 = vld [vmem:[%s1837_s1 + $0x4b0] sm:$0xff]  ;;  %v331_v27 = vld [vmem:[%s1837_s1 + $0x4b8] sm:$0xff] }
  0x41   : > { %1062 = vmatpush3.bf16.msra.mxu1 %v1061_v25  ;;  %v313_v25 = vld [vmem:[%s1837_s1 + $0x428] sm:$0xff]  ;;  %v1091_v29 = vpack.c.bf16 %v331_v27, %v330_v26  ;;  %v315_v31 = vld [vmem:[%s1837_s1 + $0x438] sm:$0xff]  ;;  %v332_v32 = vld [vmem:[%s1837_s1 + $0x4c0] sm:$0xff] }
  0x42   : > { %1064 = vmatprep.subr.bf16.mxu1 %v1063_v30  ;;  %v1089_v28 = vpack.c.bf16 %v313_v25, %v312_v24  ;;  %v314_v30 = vld [vmem:[%s1837_s1 + $0x430] sm:$0xff]  ;;  %v333_v33 = vld [vmem:[%s1837_s1 + $0x4c8] sm:$0xff]  ;;  %v335_v39 = vld [vmem:[%s1837_s1 + $0x4d8] sm:$0xff] }
  0x43   : > { %1034 = vmatpush3.bf16.msra.mxu0 %v1033_v36  ;;  %v1093_v34 = vpack.c.bf16 %v315_v31, %v314_v30  ;;  %v1095_v35 = vpack.c.bf16 %v333_v33, %v332_v32  ;;  %v316_v36 = vld [vmem:[%s1837_s1 + $0x440] sm:$0xff]  ;;  %v319_v43 = vld [vmem:[%s1837_s1 + $0x458] sm:$0xff]  ;;  %v337_v45 = vld [vmem:[%s1837_s1 + $0x4e8] sm:$0xff] }
  0x44   : > { %1036 = vmatprep.subr.bf16.mxu0 %v1035_v38  ;;  %v334_v38 = vld [vmem:[%s1837_s1 + $0x4d0] sm:$0xff]  ;;  %v336_v44 = vld [vmem:[%s1837_s1 + $0x4e0] sm:$0xff]  ;;  %v339_v51 = vld [vmem:[%s1837_s1 + $0x4f8] sm:$0xff] }
  0x45   : > { %1066 = vmatpush3.bf16.msra.mxu1 %v1065_v37  ;;  %v317_v37 = vld [vmem:[%s1837_s1 + $0x448] sm:$0xff]  ;;  %v1099_v41 = vpack.c.bf16 %v335_v39, %v334_v38  ;;  %v1103_v47 = vpack.c.bf16 %v337_v45, %v336_v44  ;;  %v323_v55 = vld [vmem:[%s1837_s1 + $0x478] sm:$0xff]  ;;  %v178_v57 = vld [vmem:[%s1438_s30 + $0x40] sm:$0xff]  ;;  %s162_s30 = sand.u32 1, %s1205_s15  }
  0x46   : > { %1068 = vmatprep.subr.bf16.mxu1 %v1067_v42  ;;  %v1097_v40 = vpack.c.bf16 %v317_v37, %v316_v36  ;;  %v318_v42 = vld [vmem:[%s1837_s1 + $0x450] sm:$0xff]  ;;  %s770_s13 = sshll.u32 %s162_s30, 3  ;;  %s694_s4 = scalar_lea.sflag [#allocation4], %s162_s30 }
  0x47   : > { %1038 = vmatpush3.bf16.msra.mxu0 %v1037_v48  ;;  %v1101_v46 = vpack.c.bf16 %v319_v43, %v318_v42  ;;  %v320_v48 = vld [vmem:[%s1837_s1 + $0x460] sm:$0xff]  ;;  %s164_s20 = scalar_lea.vmem [#allocation3], %s770_s13 }
  0x48   : > { %1040 = vmatprep.subr.bf16.mxu0 %v1039_v50  ;;  %v338_v50 = vld [vmem:[%s1837_s1 + $0x4f0] sm:$0xff]  ;;  %s707_s21 = sshll.u32 %s164_s20, 4  ;;  %s1796_s21 = int_to_ptr.vmem [resolvable:$true] %s707_s21 }
  0x49   : > { %1070 = vmatpush3.bf16.msra.mxu1 %v1069_v49  ;;  %v321_v49 = vld [vmem:[%s1837_s1 + $0x468] sm:$0xff]  ;;  %v1107_v53 = vpack.c.bf16 %v339_v51, %v338_v50  ;;  %s1151_s5 = scalar_lea.vmem %s1796_s21, 128  ;;  %p1158_p0 = scmp.lt.s32.totalorder %s1796_s21, %s1156_s6 }
  0x4a   : > { %1072 = vmatprep.subr.bf16.mxu1 %v1071_v54  ;;  %v1105_v52 = vpack.c.bf16 %v321_v49, %v320_v48  ;;  %v322_v54 = vld [vmem:[%s1837_s1 + $0x470] sm:$0xff]  ;;  %p1152_p11 = scmp.ne.s32.totalorder %s1796_s21, %s1151_s5  ;;  %p1159_p1 = scmp.lt.s32.totalorder %s1157_s7, %s1151_s5 }
  0x4b   : > { %1042 = vmatpush3.bf16.msra.mxu0 %v1041_v60  ;;  %v1109_v56 = vpack.c.bf16 %v323_v55, %v322_v54 }
  0x4c   : > { %1044 = vmatprep.subr.bf16.mxu0 %v1043_v62  ;;  %p1153_p12 = pnand %p1152_p11, %p1277_p5  ;;  %p1160_p2 = por %p1159_p1, %p1158_p0 }
  0x4d   : > { %1074 = vmatpush3.bf16.msra.mxu1 %v1073_v61 }
  0x4e   : > { %1076 = vmatprep.subr.bf16.mxu1 %v1075_v2  ;;  %p1154_p13 = pneg %p1153_p12 }
  0x4f   : > { %1046 = vmatpush3.bf16.msra.mxu0 %v1045_v6 }
  0x50   : > { %1080 = vmatprep.subr.bf16.mxu0 %v1079_v8  ;;  %p1161_p3 = pnand %p1160_p2, %p1154_p13 }
  0x51   : > { %1078 = vmatpush3.bf16.msra.mxu1 %v1077_v7 }
  0x52   : > { %547 = vmatmul.mubr.f32.vlgmr.msra.gmra.mrb[2].mxu0 %v174_v13 }
  0x53   : > { %1082 = vmatpush3.bf16.msra.mxu0 %v1081_v14  ;;  %686 = vmatprep.mubr.f32.mxu0 %v179_v21 }
  0x54   : > { %617 = vmatmul.mubr.f32.vlgmr.msra.gmra.mrb[2].mxu1 %v176_v15  ;;  %1084 = vmatprep.subr.bf16.mxu0 %v1083_v16 }
  0x57   : > { %1086 = vmatpush3.bf16.msra.mxu0 %v1085_v22 }
  0x58   : > { %1088 = vmatprep.subr.bf16.mxu0 %v1087_v23 }
  0x5b   : > { %1090 = vmatpush3.bf16.msra.mxu0 %v1089_v28 }
  0x5c   : > { %1092 = vmatprep.subr.bf16.mxu0 %v1091_v29 }
  0x5f   : > { %1094 = vmatpush3.bf16.msra.mxu0 %v1093_v34 }
  0x60   : > { %1096 = vmatprep.subr.bf16.mxu0 %v1095_v35 }
  0x63   : > { %1098 = vmatpush3.bf16.msra.mxu0 %v1097_v40 }
  0x64   : > { %1100 = vmatprep.subr.bf16.mxu0 %v1099_v41 }
  0x67   : > { %1102 = vmatpush3.bf16.msra.mxu0 %v1101_v46 }
  0x68   : > { %1104 = vmatprep.subr.bf16.mxu0 %v1103_v47 }
  0x6b   : > { %1106 = vmatpush3.bf16.msra.mxu0 %v1105_v52 }
  0x6c   : > { %1108 = vmatprep.subr.bf16.mxu0 %v1107_v53 }
  0x6f   : > { %1110 = vmatpush3.bf16.msra.mxu0 %v1109_v56 }
  0x72   : > { %687 = vmatmul.mubr.f32.vlgmr.msra.gmra.mrb[4].mxu0 %v178_v57 }
 0x105   : > { %v808_v58 = vpop.f32.mrb[0].mxu0 }
 0x106   : > { %v809_v60 = vpop.f32.mrb[1].mxu0 }
 0x107   : > { %v843_v61 = vpop.f32.mrb[0].mxu1  ;;  %v810_v62 = vadd.f32 %v809_v60, %v808_v58 }
 0x108   : > { %v844_v63 = vpop.f32.mrb[1].mxu1 }
 0x109   : > { %v845_v0 = vadd.f32 %v844_v63, %v843_v61  ;;  %v409_v1 = vadd.f32 %v810_v62, %v341_v59 }
 0x10b   : > { %v479_v2 = vadd.f32 %v845_v0, %v409_v1 }
 0x125   : > { %v878_v3 = vpop.f32.mrb[2].mxu0 }
 0x126   : > { %v879_v4 = vpop.f32.mrb[3].mxu0 }
 0x127   : > { %v913_v5 = vpop.f32.mrb[2].mxu1  ;;  %v880_v6 = vadd.f32 %v879_v4, %v878_v3 }
 0x128   : > { %v914_v7 = vpop.f32.mrb[3].mxu1 }
 0x129   : > { %v915_v8 = vadd.f32 %v914_v7, %v913_v5  ;;  %v549_v9 = vadd.f32 %v880_v6, %v479_v2 }
 0x12b   : > { %v619_v10 = vadd.f32 %v915_v8, %v549_v9 }
 0x145   : > { %v948_v11 = vpop.f32.mrb[4].mxu0 }
 0x146   : > { %v949_v12 = vpop.f32.mrb[5].mxu0 }
 0x147   : > { %v950_v13 = vadd.f32 %v949_v12, %v948_v11 }
 0x149   : > { %v689_v14 = vadd.f32 %v950_v13, %v619_v10 }
 0x14b   : > { %692 = vst [vmem:[%s164_s20] sm:$0xff] %v689_v14 }
 0x14c   : > { %1164 = shalt.err (!%p1161_p3)
}
 0x14d   : > { %s1165_s8 = scalar_lea.hbm %s1794_s27, 128  ;;  %s1169_s11 = scalar_lea.hbm %s1839_s3, 512 }
 0x14e   : > { %p1166_p4 = scmp.ne.s32.totalorder %s1794_s27, %s1165_s8  ;;  %p1170_p9 = scmp.lt.u32.totalorder %s1794_s27, %s1839_s3 }
 0x14f   : > { %p1171_p10 = scmp.lt.u32.totalorder %s1169_s11, %s1165_s8  ;;  %p1173_p12 = scmp.lt.u32.totalorder %s1165_s8, %s1794_s27 }
 0x150   : > { %p1167_p7 = pnand %p1166_p4, %p1277_p5 }
 0x151   : > { %p1172_p11 = por %p1171_p10, %p1170_p9 }
 0x152   : > { %p1168_p8 = pneg %p1167_p7 }
 0x153   : > { %p1174_p13 = por %p1173_p12, %p1172_p11 }
 0x155   : > { %p1175_p0 = pnand %p1174_p13, %p1168_p8 }
 0x157   : > { %1178 = shalt.err (!%p1175_p0)
}
 0x158   : > { %1112 = dma.vmem_to_hbm [thread:$0]  (%p1277_p5), %s1796_s21, 128, %s1794_s27, %s694_s4  }
 0x159 PF: > { %p1118_p1 = scmp.ge.s32.totalorder %s1213_s17, 2  ;;  %s719_s12 = sand.u32 1, %s1201_s14  }
 0x15a   : > { %s720_s30 = scalar_lea.sflag [#allocation4], %s719_s12 }
 0x15b   : > { %p1115_p2 = pnand %p1118_p1, %p1281_p6 }
 0x15d   : > { %1196 = dma.done.wait (!%p1115_p2), %s720_s30, 128  }
 0x15e   : > { %1198 = vsyncadd (!%p1115_p2), %s720_s30, 4294967168  ;;  %p14_p3 = scmp.ge.s32.totalorder %s1264_s19, 6   ;;  %s1842_s14 = smov %s1205_s15 }
 0x15f   : > { %s1843_s15 = smov %s1209_s16  ;;  %s1844_s16 = smov %s1275_s22 }
 0x160   : > { %s1845_s17 = smov %s1264_s19  ;;  %16 = sbr.rel (!%p14_p3) target bundleno = 5 (0x5), region = 67 }
 0x167   :  { %725 = vsyncpa [#allocation4], 1 }
 0x168   :  { %727 = vsyncpa [#allocation4 + $0x1], 1 }

</bundles_post_ra>
